<compile_context>
chip_gen: v5e
topology: v5e:2x2
jax: 0.10.0
libtpu: 0.0.40
codegen_flags: <defaults>
</compile_context>

<pallas_src>
import functools
import math

import numpy as np
import jax
import jax.numpy as jnp
from jax.experimental import pallas as pl
from jax.experimental.pallas import tpu as pltpu

_VMEM_LIMIT = 32 * 1024 * 1024          # safe on v5e/v6e/v7x; raises v5e's 16 MiB default
_TILE_VMEM_BUDGET = 20 * 1024 * 1024    # budget used to size token tiles (headroom vs limit)


# ---------------------------------------------------------------------------
# Kernels
# ---------------------------------------------------------------------------
def _linear_kernel(x_ref, w_ref, b_ref, o_ref):
    """o = x @ W + b  (x tile: [tm, K] f32, W: [K, N] mxu-dtype, b: [1, N] f32)."""
    o_ref[...] = (
        jnp.dot(x_ref[...].astype(w_ref.dtype), w_ref[...],
                preferred_element_type=jnp.float32)
        + b_ref[...]
    ).astype(o_ref.dtype)


def _cross_attention_kernel(xq_ref, kv_ref, mask_ref, wq_ref, bq_ref, o_ref, *,
                            num_heads, scale):
    """One batch item, all heads: q = xq@Wq+bq; softmax(q k^T * scale + mask) v."""
    H = wq_ref.shape[1]
    dh = H // num_heads
    mxu = wq_ref.dtype

    # Fused Q projection; fold 1/sqrt(dh) into q here (cheaper than scaling [Sq,Sk]).
    q = (jnp.dot(xq_ref[...].astype(mxu), wq_ref[...],
                 preferred_element_type=jnp.float32) + bq_ref[...]) * scale   # [Sq, H] f32
    q = q.astype(mxu)
    kv = kv_ref[...]                  # [Sk, 2H], mxu dtype (K slab | V slab)
    m = mask_ref[...]                 # [1, Sk] additive mask, f32

    # All heads in one grid step: per-head 2-D matmuls on static lane slices,
    # statically unrolled (keeps lowering simple; heads interleave across units).
    out_heads = []
    for h in range(num_heads):
        lo = h * dh
        qh = q[:, lo:lo + dh]                    # [Sq, dh]
        kh = kv[:, lo:lo + dh]                   # [Sk, dh]
        vh = kv[:, H + lo:H + lo + dh]           # [Sk, dh]
        # scores: contract head_dim without an explicit transpose
        s = jax.lax.dot_general(qh, kh,
                                dimension_numbers=(((1,), (1,)), ((), ())),
                                preferred_element_type=jnp.float32)           # [Sq, Sk]
        s = s + m
        # numerically-stable softmax over keys; divide goes to the EUP slot
        s = s - jnp.max(s, axis=-1, keepdims=True)
        p = jnp.exp(s)
        p = p * pl.reciprocal(jnp.sum(p, axis=-1, keepdims=True), approx=True)
        # TODO(synk): attention_probs dropout omitted (inference); use pltpu.prng_* for training.
        out_heads.append(jnp.dot(p.astype(mxu), vh,
                                 preferred_element_type=jnp.float32))         # [Sq, dh]

    # merged-head, lane-dense [Sq, H] store (no XLA transpose afterwards)
    o_ref[...] = jnp.concatenate(out_heads, axis=-1).astype(o_ref.dtype)


def _att_output_kernel(ctx_ref, res_ref, w_ref, b_ref, g_ref, beta_ref, o_ref):
    """BertAttOutput: dense(ctx) (+dropout=id) + residual -> LayerNorm(eps=1e-12)."""
    h = jnp.dot(ctx_ref[...].astype(w_ref.dtype), w_ref[...],
                preferred_element_type=jnp.float32) + b_ref[...]
    # TODO(synk): hidden dropout omitted (inference).
    h = h + res_ref[...]
    mean = jnp.mean(h, axis=-1, keepdims=True)
    var = jnp.mean((h - mean) ** 2, axis=-1, keepdims=True)
    h = (h - mean) * jax.lax.rsqrt(var + 1e-12)
    o_ref[...] = (h * g_ref[...] + beta_ref[...]).astype(o_ref.dtype)


# ---------------------------------------------------------------------------
# Tiling helpers
# ---------------------------------------------------------------------------
def _token_tile(n_rows, per_row_bytes, resident_bytes,
                budget_bytes=_TILE_VMEM_BUDGET, cap=1024):
    """Largest multiple-of-8 token tile whose double-buffered row blocks plus the
    (double-buffered) resident operands fit in the VMEM budget.  The grid uses
    pl.cdiv, so the tile does not need to divide n_rows (last block is masked)."""
    if n_rows <= 8:
        return n_rows
    avail = budget_bytes - 2 * resident_bytes
    t = avail // max(2 * per_row_bytes, 1)
    t = max(8, min(int(t), cap, n_rows))
    return (t // 8) * 8


def _compiler_params(semantics):
    return pltpu.CompilerParams(dimension_semantics=semantics,
                                vmem_limit_bytes=_VMEM_LIMIT)


def _tiled_linear(x, w, b, *, out_dtype):
    """Token-tiled x @ W + b with lane-dense output, f32 accumulation."""
    m, k = x.shape
    n = w.shape[1]
    in_b = np.dtype(x.dtype).itemsize
    w_b = np.dtype(w.dtype).itemsize
    out_b = np.dtype(out_dtype).itemsize
    tm = _token_tile(m, per_row_bytes=k * in_b + n * out_b,
                     resident_bytes=k * n * w_b + n * 4)
    return pl.pallas_call(
        _linear_kernel,
        out_shape=jax.ShapeDtypeStruct((m, n), out_dtype),
        grid=(pl.cdiv(m, tm),),
        in_specs=[
            pl.BlockSpec((tm, k), lambda i: (i, 0)),
            pl.BlockSpec((k, n), lambda i: (0, 0)),    # weight: index-invariant, resident
            pl.BlockSpec((1, n), lambda i: (0, 0)),    # bias
        ],
        out_specs=pl.BlockSpec((tm, n), lambda i: (i, 0)),
        compiler_params=_compiler_params(("parallel",)),
        cost_estimate=pl.CostEstimate(
            flops=2 * m * k * n, transcendentals=0,
            bytes_accessed=m * k * in_b + k * n * w_b + m * n * out_b),
    )(x, w, b)


# ---------------------------------------------------------------------------
# Full layer wrapper
# ---------------------------------------------------------------------------
def bert_crossatt_layer(input_tensor, ctx_tensor, params, num_heads,
                        ctx_att_mask=None):
    """Forward pass of BertCrossattLayer (inference)."""
    B, Sq, H = input_tensor.shape
    _, Sk, _ = ctx_tensor.shape
    dh = H // num_heads
    assert num_heads * dh == H
    mxu_dtype = params["wq"].dtype
    mxu_b = np.dtype(mxu_dtype).itemsize

    x_q = input_tensor.reshape(B * Sq, H)      # residual path (free reshape)
    x_kv = ctx_tensor.reshape(B * Sk, H)

    # --- fused K/V projection: [B*Sk, H] @ [Wk|Wv] + [bk|bv] -> [B, Sk, 2H] ---
    kv_flat = _tiled_linear(x_kv, params["wkv"], params["bkv"], out_dtype=mxu_dtype)
    kv = kv_flat.reshape(B, Sk, 2 * H)         # free reshape, no head split/transpose

    if ctx_att_mask is None:
        mask3 = jnp.zeros((B, 1, Sk), jnp.float32)
    else:
        mask3 = ctx_att_mask.reshape(B, 1, Sk).astype(jnp.float32)

    # --- attention: grid=(B,), all heads per step, Q projection fused in-kernel ---
    attn = pl.pallas_call(
        functools.partial(_cross_attention_kernel,
                          num_heads=num_heads, scale=1.0 / math.sqrt(dh)),
        out_shape=jax.ShapeDtypeStruct((B, Sq, H), mxu_dtype),
        grid=(B,),
        in_specs=[
            pl.BlockSpec((None, Sq, H), lambda b: (b, 0, 0)),       # queries' hidden states
            pl.BlockSpec((None, Sk, 2 * H), lambda b: (b, 0, 0)),   # fused K|V slab
            pl.BlockSpec((None, 1, Sk), lambda b: (b, 0, 0)),       # additive mask
            pl.BlockSpec((H, H), lambda b: (0, 0)),                 # Wq (resident)
            pl.BlockSpec((1, H), lambda b: (0, 0)),                 # bq
        ],
        out_specs=pl.BlockSpec((None, Sq, H), lambda b: (b, 0, 0)),  # lane-dense merged heads
        compiler_params=_compiler_params(("parallel",)),
        cost_estimate=pl.CostEstimate(
            flops=2 * B * Sq * H * H + 4 * B * num_heads * Sq * Sk * dh,
            transcendentals=B * num_heads * Sq * Sk,
            bytes_accessed=(B * Sq * H * 4 + B * Sk * 2 * H * mxu_b
                            + H * H * mxu_b + B * Sq * H * mxu_b)),
    )(input_tensor, kv, mask3, params["wq"], params["bq"])

    ctx_merged = attn.reshape(B * Sq, H)       # free reshape: already merged [B*Sq, H]

    # --- output dense + residual + LayerNorm (token-tiled, lane-dense) ---
    M = B * Sq
    tm = _token_tile(M, per_row_bytes=H * (mxu_b + 4 + 4),
                     resident_bytes=H * H * mxu_b + 4 * H * 4)
    out_flat = pl.pallas_call(
        _att_output_kernel,
        out_shape=jax.ShapeDtypeStruct((M, H), jnp.float32),
        grid=(pl.cdiv(M, tm),),
        in_specs=[
            pl.BlockSpec((tm, H), lambda i: (i, 0)),   # attention context (merged heads)
            pl.BlockSpec((tm, H), lambda i: (i, 0)),   # residual (input_tensor)
            pl.BlockSpec((H, H), lambda i: (0, 0)),    # Wo (resident)
            pl.BlockSpec((1, H), lambda i: (0, 0)),    # bo
            pl.BlockSpec((1, H), lambda i: (0, 0)),    # LN gamma
            pl.BlockSpec((1, H), lambda i: (0, 0)),    # LN beta
        ],
        out_specs=pl.BlockSpec((tm, H), lambda i: (i, 0)),
        compiler_params=_compiler_params(("parallel",)),
        cost_estimate=pl.CostEstimate(
            flops=2 * M * H * H, transcendentals=M,
            bytes_accessed=M * H * (mxu_b + 4 + 4) + H * H * mxu_b),
    )(ctx_merged, x_q, params["wo"], params["bo"],
      params["ln_gamma"], params["ln_beta"])

    return out_flat.reshape(B, Sq, H)


# ---------------------------------------------------------------------------
# Pure-JAX f32 reference (torch semantics) for correctness checks
# ---------------------------------------------------------------------------
def _reference(input_tensor, ctx_tensor, mask, params, num_heads):
    B, Sq, H = input_tensor.shape
    Sk = ctx_tensor.shape[1]
    dh = H // num_heads

    q = input_tensor @ params["wq"] + params["bq"]
    k = ctx_tensor @ params["wkv"][:, :H] + params["bkv"][:, :H]
    v = ctx_tensor @ params["wkv"][:, H:] + params["bkv"][:, H:]

    def split(x, S):
        return x.reshape(B, S, num_heads, dh).transpose(0, 2, 1, 3)

    qh, kh, vh = split(q, Sq), split(k, Sk), split(v, Sk)
    s = jnp.einsum("bhqd,bhkd->bhqk", qh, kh) / math.sqrt(dh)
    if mask is not None:
        s = s + mask.reshape(B, 1, 1, Sk)
    p = jax.nn.softmax(s, axis=-1)
    ctx = jnp.einsum("bhqk,bhkd->bhqd", p, vh).transpose(0, 2, 1, 3).reshape(B, Sq, H)

    h = ctx @ params["wo"] + params["bo"]
    h = h + input_tensor
    mean = jnp.mean(h, axis=-1, keepdims=True)
    var = jnp.mean((h - mean) ** 2, axis=-1, keepdims=True)
    h = (h - mean) / jnp.sqrt(var + 1e-12)
    return h * params["ln_gamma"] + params["ln_beta"]


# ---------------------------------------------------------------------------
# Main
# ---------------------------------------------------------------------------
if __name__ == "__main__":
    B, Sq, Sk, H, NH = 2, 8, 16, 32, 4   # batch, query seq, ctx seq, hidden, heads

    key = jax.random.PRNGKey(0)
    ks = jax.random.split(key, 8)

    # Weights stored once, pre-transposed to [in, out]; K/V fused as [H, 2H].
    params_f32 = {
        "wq":  0.05 * jax.random.normal(ks[0], (H, H), jnp.float32),
        "bq":  0.05 * jax.random.normal(ks[1], (1, H), jnp.float32),
        "wkv": 0.05 * jax.random.normal(ks[2], (H, 2 * H), jnp.float32),
        "bkv": 0.05 * jax.random.normal(ks[3], (1, 2 * H), jnp.float32),
        "wo":  0.05 * jax.random.normal(ks[4], (H, H), jnp.float32),
        "bo":  0.05 * jax.random.normal(ks[5], (1, H), jnp.float32),
        "ln_gamma": jnp.ones((1, H), jnp.float32),
        "ln_beta":  jnp.zeros((1, H), jnp.float32),
    }

    input_tensor = jax.random.normal(ks[6], (B, Sq, H), jnp.float32)
    ctx_tensor = jax.random.normal(ks[7], (B, Sk, H), jnp.float32)
    # additive cross-attention mask: batch 0 sees all ctx tokens, batch 1 masks last 4
    lengths = jnp.array([Sk, Sk - 4])[:, None]
    ctx_att_mask = jnp.where(jnp.arange(Sk)[None, :] < lengths,
                             0.0, -10000.0).astype(jnp.float32)   # [B, Sk]

    ref = _reference(input_tensor, ctx_tensor, ctx_att_mask, params_f32, NH)

    # Run the kernel both in exact f32 (tight check) and bf16-MXU / f32-accumulate
    # (production configuration, looser tolerance vs. the f32 reference).
    for mxu_dtype, tol in ((jnp.float32, 2e-3), (jnp.bfloat16, 3e-2)):
        kparams = dict(params_f32)
        for name in ("wq", "wkv", "wo"):
            kparams[name] = params_f32[name].astype(mxu_dtype)
        out = bert_crossatt_layer(input_tensor, ctx_tensor, kparams, NH,
                                  ctx_att_mask=ctx_att_mask)
        jax.block_until_ready(out)
        assert out.shape == (B, Sq, H)
        err = float(jnp.max(jnp.abs(out.astype(jnp.float32) - ref)))
        assert err < tol, (str(mxu_dtype), err)

    print("KERNEL_OK")
</pallas_src>

<mosaic_0001>
module attributes {stable_mosaic.version = 11 : i64} {
  func.func @_linear_kernel(%arg0: i32, %arg1: memref<32x32xf32, #tpu.memory_space<vmem>>, %arg2: memref<32x64xf32, #tpu.memory_space<vmem>>, %arg3: memref<1x64xf32, #tpu.memory_space<vmem>>, %arg4: memref<32x64xf32, #tpu.memory_space<vmem>>) attributes {dimension_semantics = [#tpu.dimension_semantics<parallel>], iteration_bounds = array<i64: 1>, scalar_prefetch = 0 : i64, scratch_operands = 0 : i64, tpu.core_type = #tpu.core_type<tc>, window_params = [{transform_indices = @transform_0, window_bounds = array<i64: 32, 32>}, {pipeline_mode = #tpu.pipeline_mode<synchronous>, transform_indices = @transform_1, window_bounds = array<i64: 32, 64>}, {pipeline_mode = #tpu.pipeline_mode<synchronous>, transform_indices = @transform_2, window_bounds = array<i64: 1, 64>}, {transform_indices = @transform_3, window_bounds = array<i64: 32, 64>}]} {
    %c0 = arith.constant 0 : index
    %c0_0 = arith.constant 0 : index
    %0 = vector.load %arg1[%c0, %c0_0] : memref<32x32xf32, #tpu.memory_space<vmem>>, vector<32x32xf32>
    %c0_1 = arith.constant 0 : index
    %c0_2 = arith.constant 0 : index
    %1 = vector.load %arg2[%c0_1, %c0_2] : memref<32x64xf32, #tpu.memory_space<vmem>>, vector<32x64xf32>
    %cst = arith.constant dense<0.000000e+00> : vector<32x64xf32>
    %2 = tpu.matmul %0, %1, %cst {dimension_numbers = #tpu.dot_dimension_numbers<[1], [0], [0], [1], [0, 0, 1, 1], [], []>} : vector<32x32xf32>, vector<32x64xf32>, vector<32x64xf32> -> vector<32x64xf32>
    %c0_3 = arith.constant 0 : index
    %c0_4 = arith.constant 0 : index
    %3 = vector.load %arg3[%c0_3, %c0_4] : memref<1x64xf32, #tpu.memory_space<vmem>>, vector<1x64xf32>
    %4 = vector.broadcast %3 : vector<1x64xf32> to vector<32x64xf32>
    %5 = arith.addf %2, %4 : vector<32x64xf32>
    %c0_5 = arith.constant 0 : index
    %c0_6 = arith.constant 0 : index
    %6 = vector.load %arg4[%c0_5, %c0_6] : memref<32x64xf32, #tpu.memory_space<vmem>>, vector<32x64xf32>
    tpu.vector_store %arg4[%c0_5, %c0_6], %5 {strides = array<i32>} : memref<32x64xf32, #tpu.memory_space<vmem>>, vector<32x64xf32>,
    return
  }
  func.func @transform_0(%arg0: i32) -> (i32, i32) {
    %c0_i32 = arith.constant 0 : i32
    %c0_i32_0 = arith.constant 0 : i32
    return %arg0, %c0_i32 : i32, i32
  }
  func.func @transform_1(%arg0: i32) -> (i32, i32) {
    %c0_i32 = arith.constant 0 : i32
    %c0_i32_0 = arith.constant 0 : i32
    %c0_i32_1 = arith.constant 0 : i32
    return %c0_i32, %c0_i32_0 : i32, i32
  }
  func.func @transform_2(%arg0: i32) -> (i32, i32) {
    %c0_i32 = arith.constant 0 : i32
    %c0_i32_0 = arith.constant 0 : i32
    %c0_i32_1 = arith.constant 0 : i32
    return %c0_i32, %c0_i32_0 : i32, i32
  }
  func.func @transform_3(%arg0: i32) -> (i32, i32) {
    %c0_i32 = arith.constant 0 : i32
    %c0_i32_0 = arith.constant 0 : i32
    return %arg0, %c0_i32 : i32, i32
  }
}

</mosaic_0001>

<bundles_post_ra>
// kernel: tpu_custom_call.1
= control target key start
LH: loop header
LB: loop body
LE: loop exit
PB: predicated region body
PF: predicated region fallthrough
CT: control target
= control target key end

     0   :  { %8 = vsyncpa [#allocation3], 0  ;;  %s276_s0 = inlined_call_operand.hbm [shape: f32[32,32], index: 0, kind: input, shape index: {}]   ;;  %s277_s1 = inlined_call_operand.hbm [shape: f32[32,64], index: 1, kind: input, shape index: {}]   ;;  %s278_s2 = inlined_call_operand.vmem [shape: f32[1,64], index: 2, kind: input, shape index: {}]   ;;  %s279_s3 = inlined_call_operand.hbm [shape: f32[32,64], index: 3, kind: output, shape index: {}]  }
   0x1   :  { %9 = vsyncpa [#allocation6], 0 }
   0x2   :  { %10 = vsyncpa [#allocation4], 0  ;;  %s15_s14 = sshll.u32 %s276_s0, 4  ;;  %s226_s15 = smov [#allocation2]   ;;  %s16_s14 = int_to_ptr.hbm [resolvable:$true] %s15_s14 }
   0x3   :  { %s17_s16 = sshll.u32 %s226_s15, 4  ;;  %s28_s19 = sshll.u32 %s277_s1, 4  ;;  %s18_s16 = int_to_ptr.vmem [resolvable:$true] %s17_s16  ;;  %s29_s19 = int_to_ptr.hbm [resolvable:$true] %s28_s19 }
   0x4   :  { %s227_s20 = smov 128   ;;  %s228_s21 = smov 8  }
   0x5   :  { %23 = dma.hbm_to_vmem [thread:$0]  %s16_s14, 512, %s18_s16, [#allocation3], %s227_s20, %s227_s20, %s228_s21  }
   0x6   :  { %s229_s22 = smov [#allocation5]  }
   0x7   :  { %s30_s23 = sshll.u32 %s229_s22, 4  ;;  %s31_s23 = int_to_ptr.vmem [resolvable:$true] %s30_s23 }
   0x8   :  { %36 = dma.hbm_to_vmem [thread:$0]  %s29_s19, 512, %s31_s23, [#allocation6], %s227_s20, %s227_s20, %s228_s21  }
   0x9   :  { %220 = dma.done.wait [#allocation3], 512  }
   0xa   :  { %221 = vsyncadd [#allocation3], 4294966784 }
   0xb   :  { %222 = dma.done.wait [#allocation6], 512  }
   0xc   :  { %223 = vsyncadd [#allocation6], 4294966784  ;;  %v54_v0 = vld [vmem:[#allocation5 + $0x18] sm:$0xff]  ;;  %v53_v1 = vld [vmem:[#allocation5 + $0x10] sm:$0xff]  ;;  %vm59_vm0 = vcmask 261120   ;;  %vm101_vm1 = vcmask 523264  }
   0xd   :  { %131 = vmatpush.msra.mxu2 %v54_v0  ;;  %132 = vmatpush.msra.mxu3 %v54_v0  ;;  %v52_v2 = vld [vmem:[#allocation5 + $0x8] sm:$0xff]  ;;  %v51_v3 = vld [vmem:[#allocation5] sm:$0xff]  ;;  %v49_v4 = vld [vmem:[#allocation2 + $0x10] sm:$0xff]  ;;  %s230_s24 = smov [#allocation7]   ;;  %s112_s28 = sshll.u32 %s279_s3, 4  ;;  %s113_s28 = int_to_ptr.hbm [resolvable:$true] %s112_s28 }
   0xe   :  { %84 = vmatpush.msra.mxu0 %v54_v0  ;;  %130 = vmatpush.msra.mxu1 %v54_v0  ;;  %v50_v5 = vld [vmem:[#allocation2 + $0x18] sm:$0xff]  ;;  %v47_v6 = vld [vmem:[#allocation2] sm:$0xff]  ;;  %v48_v7 = vld [vmem:[#allocation2 + $0x8] sm:$0xff]  ;;  %s110_s25 = sshll.u32 %s230_s24, 4  ;;  %s111_s25 = int_to_ptr.vmem [resolvable:$true] %s110_s25 }
   0xf   :  { %134 = vmatpush.msra.mxu2 %v53_v1  ;;  %135 = vmatpush.msra.mxu3 %v53_v1  ;;  %v147_v8 = vld [vmem:[%s278_s2] ss:$0 sm:$0xff] }
  0x10   :  { %85 = vmatpush.msra.mxu0 %v53_v1  ;;  %133 = vmatpush.msra.mxu1 %v53_v1 }
  0x11   :  { %137 = vmatpush.msra.mxu2 %v52_v2  ;;  %138 = vmatpush.msra.mxu3 %v52_v2 }
  0x12   :  { %86 = vmatpush.msra.mxu0 %v52_v2  ;;  %136 = vmatpush.msra.mxu1 %v52_v2 }
  0x13   :  { %140 = vmatpush.msra.mxu2 %v51_v3  ;;  %141 = vmatpush.msra.mxu3 %v51_v3 }
  0x14   :  { %128 = vmatmul.msk.f32.vlgmr.msra.gmra.mxu2 %vm59_vm0, %v49_v4  ;;  %129 = vmatmul.msk.f32.vlgmr.msra.gmra.mxu3 %vm59_vm0, %v50_v5 }
  0x15   :  { %87 = vmatpush.msra.mxu0 %v51_v3  ;;  %139 = vmatpush.msra.mxu1 %v51_v3 }
  0x16   :  { %126 = vmatmul.msk.f32.vlgmr.msra.gmra.mxu0 %vm59_vm0, %v47_v6  ;;  %127 = vmatmul.msk.f32.vlgmr.msra.gmra.mxu1 %vm59_vm0, %v48_v7 }
  0x93   :  { %v89_v9 = vpop.f32.mrf.mxu0  ;;  %v92_v10 = vpop.f32.mrf.mxu1 }
  0x94   :  { %v90_v11 = vadd.f32 %v147_v8, %v89_v9  ;;  %v93_v12 = vadd.f32 %v147_v8, %v92_v10 }
  0x96   :  { %102 = vst.msk [vmem:[#allocation7] sm:$0xff] %vm101_vm1, %v90_v11 }
  0x97   :  { %103 = vst.msk [vmem:[#allocation7 + $0x8] sm:$0xff] %vm101_vm1, %v93_v12  ;;  %v95_v13 = vpop.f32.mrf.mxu2  ;;  %v98_v14 = vpop.f32.mrf.mxu3 }
  0x98   :  { %v96_v15 = vadd.f32 %v147_v8, %v95_v13  ;;  %v99_v16 = vadd.f32 %v147_v8, %v98_v14 }
  0x9a   :  { %104 = vst.msk [vmem:[#allocation7 + $0x10] sm:$0xff] %vm101_vm1, %v96_v15 }
  0x9b   :  { %105 = vst.msk [vmem:[#allocation7 + $0x18] sm:$0xff] %vm101_vm1, %v99_v16 }
  0x9c   :  { %118 = dma.vmem_to_hbm [thread:$0]  %s111_s25, 512, %s113_s28, [#allocation4], %s227_s20, %s227_s20, %s228_s21  }
  0x9d   :  { %224 = dma.done.wait [#allocation4], 512  }
  0x9e   :  { %225 = vsyncadd [#allocation4], 4294966784 }
  0x9f   :  { %123 = vsyncpa [#allocation3], 1 }
  0xa0   :  { %124 = vsyncpa [#allocation6], 1 }
  0xa1   :  { %125 = vsyncpa [#allocation4], 1 }

</bundles_post_ra>
